<compile_context>
chip_gen: v6e
topology: v6e:2x2x1
jax: 0.10.0
libtpu: 0.0.40
codegen_flags: <defaults>
</compile_context>

<pallas_src>
import functools
import math

import jax
import jax.numpy as jnp
import numpy as np
from jax.experimental import pallas as pl
from jax.experimental.pallas import tpu as pltpu


def _round_up(v, m):
    return ((v + m - 1) // m) * m


# ---------------------------------------------------------------------------
# In-kernel math helpers (mul/add/exp/where/recip only -> guaranteed lowerable)
# ---------------------------------------------------------------------------
def _gelu_exact(x):
    """PyTorch nn.GELU() default: 0.5 * x * (1 + erf(x / sqrt(2))).

    erf via Abramowitz & Stegun 7.1.26 (|abs err| < 1.5e-7).  The divide goes to the
    EUP (approx reciprocal) with one Newton step to restore f32 accuracy; exp is EUP.
    """
    a1, a2, a3, a4, a5 = (0.254829592, -0.284496736, 1.421413741,
                          -1.453152027, 1.061405429)
    p = 0.3275911
    z = x * 0.7071067811865476
    az = jnp.abs(z)
    d = 1.0 + p * az
    t = pl.reciprocal(d, approx=True)
    t = t * (2.0 - d * t)                       # one Newton step -> ~f32 accurate
    poly = ((((a5 * t + a4) * t + a3) * t + a2) * t + a1) * t
    erf_abs = 1.0 - poly * jnp.exp(-az * az)
    erf = jnp.where(z >= 0.0, erf_abs, -erf_abs)
    return 0.5 * x * (1.0 + erf)


# ---------------------------------------------------------------------------
# Fused kernel: conv1 + BN1 + GELU + conv2 + BN2 + GELU + downsample residual.
# One grid step = one (batch element, time tile).  The causal halo (last H rows
# of x and of the conv1 activation) is carried in the VMEM window scratch across
# consecutive time tiles (time axis is the sequential "arbitrary" grid axis).
# ---------------------------------------------------------------------------
def _temporal_block_kernel(x_ref,            # (Lt, Cin)     current time tile of x
                           w1_ref,           # (K*Ci, Co)    conv1 taps (BN1 scale folded)
                           w2_ref,           # (K*Co, Co)    conv2 taps (BN2 scale folded)
                           wd_ref,           # (Ci, Co)      1x1 downsample
                           vec_ref,          # (8, Co)       rows: 0=u1, 1=u2, 2=bd
                           out_ref,          # (Lt, Cout)
                           xwin_ref,         # (H+Lt, Ci)    VMEM window scratch (x)
                           hwin_ref,         # (H+Lt, Co)    VMEM window scratch (h1)
                           *, K, dilation, pad, H, Cin, Cout, Ci, Co):
    Lt = out_ref.shape[0]
    t = pl.program_id(1)

    # Reset the windows at the start of every sequence: zero causal halo AND zero
    # lane padding (columns >= Cin / >= Cout are never written afterwards).
    @pl.when(t == 0)
    def _():
        xwin_ref[...] = jnp.zeros(xwin_ref.shape, xwin_ref.dtype)
        hwin_ref[...] = jnp.zeros(hwin_ref.shape, hwin_ref.dtype)

    # Current x tile into window rows [H:], channels [0:Cin) (pad lanes stay zero).
    xwin_ref[pl.ds(H, Lt), pl.ds(0, Cin)] = x_ref[...].astype(xwin_ref.dtype)

    off = H - pad                                     # >= 0; window rows [0, off) unused

    # ---- conv1: K accumulating MXU dots on shifted window views ---------------------
    c1 = jnp.dot(xwin_ref[pl.ds(off, Lt), :], w1_ref[pl.ds(0, Ci), :],
                 preferred_element_type=jnp.float32)
    for k in range(1, K):
        c1 += jnp.dot(xwin_ref[pl.ds(off + k * dilation, Lt), :],
                      w1_ref[pl.ds(k * Ci, Ci), :],
                      preferred_element_type=jnp.float32)

    # ---- fused 1x1 downsample residual (reads the current tile rows exactly) --------
    res = jnp.dot(xwin_ref[pl.ds(H, Lt), :], wd_ref[...],
                  preferred_element_type=jnp.float32) + vec_ref[2:3, :]

    # ---- BN1 (scale pre-folded) + GELU ----------------------------------------------
    h1 = _gelu_exact(c1 + vec_ref[0:1, :])                           # (Lt, Co)
    hwin_ref[pl.ds(H, Lt), :] = h1.astype(hwin_ref.dtype)

    # ---- conv2: K accumulating MXU dots on shifted window views ---------------------
    c2 = jnp.dot(hwin_ref[pl.ds(off, Lt), :], w2_ref[pl.ds(0, Co), :],
                 preferred_element_type=jnp.float32)
    for k in range(1, K):
        c2 += jnp.dot(hwin_ref[pl.ds(off + k * dilation, Lt), :],
                      w2_ref[pl.ds(k * Co, Co), :],
                      preferred_element_type=jnp.float32)

    y = _gelu_exact(c2 + vec_ref[1:2, :]) + res                      # (Lt, Co)
    out_ref[...] = y[:, :Cout].astype(out_ref.dtype)

    # ---- carry causal halos (aligned: Lt, H are multiples of 8) ----------------------
    xwin_ref[pl.ds(0, H), :] = xwin_ref[pl.ds(Lt, H), :]
    hwin_ref[pl.ds(0, H), :] = hwin_ref[pl.ds(Lt, H), :]


# ---------------------------------------------------------------------------
# Wrapper: layout, BN/bias folding, weight padding, pallas_call
# ---------------------------------------------------------------------------
def _prepare_kernel_params(params, *, K, Cin, Cout, Ci, Co, matmul_dtype):
    (w1, b1, s1, t1, w2, b2, s2, t2, wd, bd) = params
    f32 = jnp.float32
    vec = lambda a: a.reshape(-1).astype(f32)
    b1, s1, t1 = vec(b1), vec(s1), vec(t1)
    b2, s2, t2 = vec(b2), vec(s2), vec(t2)
    bd = vec(bd)

    # Fold BN scale into conv weights and conv bias into BN shift:
    #   s*(x@w + b) + t == x@(w*s) + (t + s*b)
    u1 = t1 + s1 * b1
    u2 = t2 + s2 * b2
    w1f = w1.astype(f32) * s1[None, None, :]                         # (K, Cin, Cout)
    w2f = w2.astype(f32) * s2[None, None, :]                         # (K, Cout, Cout)

    w1p = jnp.zeros((K, Ci, Co), f32).at[:, :Cin, :Cout].set(w1f).reshape(K * Ci, Co)
    w2p = jnp.zeros((K, Co, Co), f32).at[:, :Cout, :Cout].set(w2f).reshape(K * Co, Co)
    wdp = jnp.zeros((Ci, Co), f32).at[:Cin, :Cout].set(wd.astype(f32))

    def padvec(v):
        return jnp.pad(v, (0, Co - Cout))

    vecs = jnp.stack([padvec(u1), padvec(u2), padvec(bd)]
                     + [jnp.zeros((Co,), f32)] * 5, axis=0)          # (8, Co)

    return (w1p.astype(matmul_dtype), w2p.astype(matmul_dtype),
            wdp.astype(matmul_dtype), vecs)


def temporal_block_forward(x_ncl, params, *, kernel_size, dilation,
                           time_tile=1024, matmul_dtype=jnp.float32):
    """x_ncl: (N, Cin, L) float32 (PyTorch NCL). Returns (N, Cout, L) float32."""
    N, Cin, L = x_ncl.shape
    Cout = params[0].shape[2]
    K = kernel_size
    pad = (K - 1) * dilation

    LANE, SUB = 128, 8
    Ci = _round_up(max(Cin, 1), LANE)
    Co = _round_up(max(Cout, 1), LANE)
    H = max(SUB, _round_up(max(pad, 1), SUB))        # carried-halo rows (sublane aligned)

    Lt = min(int(time_tile), _round_up(L, SUB))
    Lt = _round_up(max(Lt, H), SUB)                  # tile must cover the halo
    Tpad = _round_up(L, Lt)
    T = Tpad // Lt

    # channels-last; only the time axis is zero-padded (channels stay UNPADDED in
    # HBM -- the zero lane padding happens inside the kernel's VMEM window scratch).
    x = jnp.transpose(x_ncl, (0, 2, 1)).astype(jnp.float32)          # (N, L, Cin)
    x = jnp.pad(x, ((0, 0), (0, Tpad - L), (0, 0)))                  # (N, Tpad, Cin)

    w1p, w2p, wdp, vecs = _prepare_kernel_params(
        params, K=K, Cin=Cin, Cout=Cout, Ci=Ci, Co=Co, matmul_dtype=matmul_dtype)

    kernel = functools.partial(_temporal_block_kernel,
                               K=K, dilation=dilation, pad=pad, H=H,
                               Cin=Cin, Cout=Cout, Ci=Ci, Co=Co)

    # VMEM budget derived from the actual tile (double-buffered I/O + resident weights
    # + window scratch + generous headroom for c1/h1/c2/res temporaries).
    dtb = jnp.dtype(matmul_dtype).itemsize
    est_vmem = (2 * Lt * Cin * 4 + 2 * Lt * Cout * 4
                + 2 * (K * Ci * Co + K * Co * Co + Ci * Co) * dtb
                + 2 * 8 * Co * 4
                + (H + Lt) * (Ci + Co) * dtb
                + 8 * Lt * Co * 4)
    vmem_limit = int(min(64 * 1024 * 1024, max(32 * 1024 * 1024, 2 * est_vmem)))

    x_spec = pl.BlockSpec((None, Lt, Cin), lambda n, t: (n, t, 0))
    out_spec = pl.BlockSpec((None, Lt, Cout), lambda n, t: (n, t, 0))
    w1_spec = pl.BlockSpec(w1p.shape, lambda n, t: (0, 0))           # weights stay resident
    w2_spec = pl.BlockSpec(w2p.shape, lambda n, t: (0, 0))
    wd_spec = pl.BlockSpec(wdp.shape, lambda n, t: (0, 0))
    vec_spec = pl.BlockSpec(vecs.shape, lambda n, t: (0, 0))

    out = pl.pallas_call(
        kernel,
        out_shape=jax.ShapeDtypeStruct((N, Tpad, Cout), jnp.float32),
        grid_spec=pltpu.PrefetchScalarGridSpec(
            num_scalar_prefetch=0,
            grid=(N, T),
            in_specs=[x_spec, w1_spec, w2_spec, wd_spec, vec_spec],
            out_specs=out_spec,
            scratch_shapes=[pltpu.VMEM((H + Lt, Ci), matmul_dtype),
                            pltpu.VMEM((H + Lt, Co), matmul_dtype)],
        ),
        compiler_params=pltpu.CompilerParams(
            dimension_semantics=("parallel", "arbitrary"),
            vmem_limit_bytes=vmem_limit,
        ),
    )(x, w1p, w2p, wdp, vecs)

    out = out[:, :L, :]                                              # drop time padding
    return jnp.transpose(out, (0, 2, 1))                             # back to (N, Cout, L)


# ---------------------------------------------------------------------------
# Deterministic parameter construction + pure-JAX reference
# ---------------------------------------------------------------------------
def make_params(key, in_channels, out_channels, kernel_size, eps=1e-5):
    ks = jax.random.split(key, 12)

    def u(k, shape, scale):
        return jax.random.uniform(k, shape, jnp.float32, -scale, scale)

    sc1 = 1.0 / math.sqrt(in_channels * kernel_size)
    sc2 = 1.0 / math.sqrt(out_channels * kernel_size)
    scd = 1.0 / math.sqrt(in_channels)

    # conv weights in (K, Cin, Cout) layout (== transpose of PyTorch (Cout, Cin, K))
    w1 = u(ks[0], (kernel_size, in_channels, out_channels), sc1)
    b1 = u(ks[1], (out_channels,), sc1)
    w2 = u(ks[2], (kernel_size, out_channels, out_channels), sc2)
    b2 = u(ks[3], (out_channels,), sc2)
    wd = u(ks[4], (in_channels, out_channels), scd)
    bd = u(ks[5], (out_channels,), scd)

    # BatchNorm (eval mode): deterministic non-trivial affine + running stats.
    g1 = 1.0 + 0.1 * jax.random.normal(ks[6], (out_channels,), jnp.float32)
    be1 = 0.1 * jax.random.normal(ks[7], (out_channels,), jnp.float32)
    m1 = 0.1 * jax.random.normal(ks[8], (out_channels,), jnp.float32)
    v1 = 1.0 + 0.1 * jnp.abs(jax.random.normal(ks[9], (out_channels,), jnp.float32))
    g2 = 1.0 + 0.1 * jax.random.normal(ks[10], (out_channels,), jnp.float32)
    be2 = 0.1 * jax.random.normal(ks[11], (out_channels,), jnp.float32)
    m2 = jnp.zeros((out_channels,), jnp.float32)
    v2 = jnp.ones((out_channels,), jnp.float32)

    s1 = g1 / jnp.sqrt(v1 + eps)
    t1 = be1 - m1 * s1
    s2 = g2 / jnp.sqrt(v2 + eps)
    t2 = be2 - m2 * s2

    r = lambda a: a.reshape(1, 1, -1)
    return (w1, r(b1), r(s1), r(t1), w2, r(b2), r(s2), r(t2), wd, r(bd))


def reference_forward(x_ncl, params, *, kernel_size, dilation):
    (w1, b1, s1, t1, w2, b2, s2, t2, wd, bd) = params
    pad = (kernel_size - 1) * dilation
    x = jnp.transpose(x_ncl, (0, 2, 1))
    N, L, _ = x.shape

    def causal_conv(xp, w, b):
        out = jnp.zeros((N, L, w.shape[2]), jnp.float32)
        for k in range(kernel_size):
            out = out + jnp.einsum("nlc,co->nlo",
                                   xp[:, k * dilation:k * dilation + L, :], w[k])
        return out + b

    xpad = jnp.pad(x, ((0, 0), (pad, 0), (0, 0)))
    g1 = jax.nn.gelu(causal_conv(xpad, w1, b1) * s1 + t1, approximate=False)
    g1p = jnp.pad(g1, ((0, 0), (pad, 0), (0, 0)))
    g2 = jax.nn.gelu(causal_conv(g1p, w2, b2) * s2 + t2, approximate=False)
    res = jnp.einsum("nlc,co->nlo", x, wd) + bd
    return jnp.transpose(g2 + res, (0, 2, 1))


if __name__ == "__main__":
    # small shapes consistent with Conv1d input (N, C_in, L)
    N, C_IN, C_OUT, L = 2, 4, 8, 16
    KERNEL_SIZE, DILATION = 3, 2

    key = jax.random.PRNGKey(0)
    k_x, k_p = jax.random.split(key)
    x = jax.random.normal(k_x, (N, C_IN, L), jnp.float32)
    params = make_params(k_p, C_IN, C_OUT, KERNEL_SIZE)

    # f32 matmul path (tight tolerance)
    y = temporal_block_forward(x, params, kernel_size=KERNEL_SIZE, dilation=DILATION)
    y = jax.block_until_ready(y)
    y_ref = reference_forward(x, params, kernel_size=KERNEL_SIZE, dilation=DILATION)
    np.testing.assert_allclose(np.asarray(y), np.asarray(y_ref), rtol=2e-4, atol=2e-4)
    assert y.shape == (N, C_OUT, L)

    # multiple time tiles: validates the halo carry across the sequential time axis
    # and right-side time padding
    L2 = 40
    x2 = jax.random.normal(jax.random.PRNGKey(1), (N, C_IN, L2), jnp.float32)
    y2 = temporal_block_forward(x2, params, kernel_size=KERNEL_SIZE,
                                dilation=DILATION, time_tile=16)
    y2 = jax.block_until_ready(y2)
    y2_ref = reference_forward(x2, params, kernel_size=KERNEL_SIZE, dilation=DILATION)
    np.testing.assert_allclose(np.asarray(y2), np.asarray(y2_ref), rtol=2e-4, atol=2e-4)

    # bf16 MXU-operand path (review item): relaxed tolerance, f32 accumulation/epilogue
    y_bf = temporal_block_forward(x, params, kernel_size=KERNEL_SIZE, dilation=DILATION,
                                  matmul_dtype=jnp.bfloat16)
    y_bf = jax.block_until_ready(y_bf)
    np.testing.assert_allclose(np.asarray(y_bf), np.asarray(y_ref), rtol=5e-2, atol=5e-2)

    print("KERNEL_OK")
</pallas_src>

<mosaic_0001>
module attributes {stable_mosaic.version = 11 : i64} {
  func.func @_temporal_block_kernel(%arg0: i32, %arg1: i32, %arg2: memref<1x16x4xf32, #tpu.memory_space<vmem>>, %arg3: memref<384x128xf32, #tpu.memory_space<vmem>>, %arg4: memref<384x128xf32, #tpu.memory_space<vmem>>, %arg5: memref<128x128xf32, #tpu.memory_space<vmem>>, %arg6: memref<8x128xf32, #tpu.memory_space<vmem>>, %arg7: memref<1x16x8xf32, #tpu.memory_space<vmem>>, %arg8: memref<24x128xf32, #tpu.memory_space<vmem>>, %arg9: memref<24x128xf32, #tpu.memory_space<vmem>>) attributes {dimension_semantics = [#tpu.dimension_semantics<parallel>, #tpu.dimension_semantics<arbitrary>], iteration_bounds = array<i64: 2, 1>, scalar_prefetch = 0 : i64, scratch_operands = 2 : i64, tpu.core_type = #tpu.core_type<tc>, window_params = [{transform_indices = @transform_0, window_bounds = array<i64: 1, 16, 4>}, {pipeline_mode = #tpu.pipeline_mode<synchronous>, transform_indices = @transform_1, window_bounds = array<i64: 384, 128>}, {pipeline_mode = #tpu.pipeline_mode<synchronous>, transform_indices = @transform_2, window_bounds = array<i64: 384, 128>}, {pipeline_mode = #tpu.pipeline_mode<synchronous>, transform_indices = @transform_3, window_bounds = array<i64: 128, 128>}, {pipeline_mode = #tpu.pipeline_mode<synchronous>, transform_indices = @transform_4, window_bounds = array<i64: 8, 128>}, {transform_indices = @transform_5, window_bounds = array<i64: 1, 16, 8>}]} {
    %c0_i32 = arith.constant 0 : i32
    %0 = arith.cmpi eq, %arg1, %c0_i32 : i32
    %1 = arith.extui %0 : i1 to i32
    %c0_i32_0 = arith.constant 0 : i32
    %2 = arith.cmpi ne, %1, %c0_i32_0 : i32
    scf.if %2 {
      %cst_80 = arith.constant 0.000000e+00 : f32
      %136 = vector.broadcast %cst_80 : f32 to vector<24x128xf32>
      %c0_81 = arith.constant 0 : index
      %c0_82 = arith.constant 0 : index
      %137 = vector.load %arg8[%c0_81, %c0_82] : memref<24x128xf32, #tpu.memory_space<vmem>>, vector<24x128xf32>
      tpu.vector_store %arg8[%c0_81, %c0_82], %136 {strides = array<i32>} : memref<24x128xf32, #tpu.memory_space<vmem>>, vector<24x128xf32>,
      %cst_83 = arith.constant 0.000000e+00 : f32
      %138 = vector.broadcast %cst_83 : f32 to vector<24x128xf32>
      %c0_84 = arith.constant 0 : index
      %c0_85 = arith.constant 0 : index
      %139 = vector.load %arg9[%c0_84, %c0_85] : memref<24x128xf32, #tpu.memory_space<vmem>>, vector<24x128xf32>
      tpu.vector_store %arg9[%c0_84, %c0_85], %138 {strides = array<i32>} : memref<24x128xf32, #tpu.memory_space<vmem>>, vector<24x128xf32>,
    } else {
    }
    %c0 = arith.constant 0 : index
    %c0_1 = arith.constant 0 : index
    %c0_2 = arith.constant 0 : index
    %3 = vector.load %arg2[%c0, %c0_1, %c0_2] : memref<1x16x4xf32, #tpu.memory_space<vmem>>, vector<1x16x4xf32>
    %4 = vector.shape_cast %3 : vector<1x16x4xf32> to vector<16x4xf32>
    %c8 = arith.constant 8 : index
    %c0_3 = arith.constant 0 : index
    %5 = vector.load %arg8[%c8, %c0_3] : memref<24x128xf32, #tpu.memory_space<vmem>>, vector<16x4xf32>
    tpu.vector_store %arg8[%c8, %c0_3], %4 {strides = array<i32>} : memref<24x128xf32, #tpu.memory_space<vmem>>, vector<16x4xf32>,
    %c4 = arith.constant 4 : index
    %c0_4 = arith.constant 0 : index
    %6 = vector.load %arg8[%c4, %c0_4] : memref<24x128xf32, #tpu.memory_space<vmem>>, vector<16x128xf32>
    %c0_5 = arith.constant 0 : index
    %c0_6 = arith.constant 0 : index
    %7 = vector.load %arg3[%c0_5, %c0_6] : memref<384x128xf32, #tpu.memory_space<vmem>>, vector<128x128xf32>
    %cst = arith.constant dense<0.000000e+00> : vector<16x128xf32>
    %8 = tpu.matmul %6, %7, %cst {dimension_numbers = #tpu.dot_dimension_numbers<[1], [0], [0], [1], [0, 0, 1, 1], [], []>} : vector<16x128xf32>, vector<128x128xf32>, vector<16x128xf32> -> vector<16x128xf32>
    %c6 = arith.constant 6 : index
    %c0_7 = arith.constant 0 : index
    %9 = vector.load %arg8[%c6, %c0_7] : memref<24x128xf32, #tpu.memory_space<vmem>>, vector<16x128xf32>
    %c128 = arith.constant 128 : index
    %c0_8 = arith.constant 0 : index
    %10 = vector.load %arg3[%c128, %c0_8] : memref<384x128xf32, #tpu.memory_space<vmem>>, vector<128x128xf32>
    %cst_9 = arith.constant dense<0.000000e+00> : vector<16x128xf32>
    %11 = tpu.matmul %9, %10, %cst_9 {dimension_numbers = #tpu.dot_dimension_numbers<[1], [0], [0], [1], [0, 0, 1, 1], [], []>} : vector<16x128xf32>, vector<128x128xf32>, vector<16x128xf32> -> vector<16x128xf32>
    %12 = arith.addf %8, %11 : vector<16x128xf32>
    %c8_10 = arith.constant 8 : index
    %c0_11 = arith.constant 0 : index
    %13 = vector.load %arg8[%c8_10, %c0_11] : memref<24x128xf32, #tpu.memory_space<vmem>>, vector<16x128xf32>
    %c256 = arith.constant 256 : index
    %c0_12 = arith.constant 0 : index
    %14 = vector.load %arg3[%c256, %c0_12] : memref<384x128xf32, #tpu.memory_space<vmem>>, vector<128x128xf32>
    %cst_13 = arith.constant dense<0.000000e+00> : vector<16x128xf32>
    %15 = tpu.matmul %13, %14, %cst_13 {dimension_numbers = #tpu.dot_dimension_numbers<[1], [0], [0], [1], [0, 0, 1, 1], [], []>} : vector<16x128xf32>, vector<128x128xf32>, vector<16x128xf32> -> vector<16x128xf32>
    %16 = arith.addf %12, %15 : vector<16x128xf32>
    %c8_14 = arith.constant 8 : index
    %c0_15 = arith.constant 0 : index
    %17 = vector.load %arg8[%c8_14, %c0_15] : memref<24x128xf32, #tpu.memory_space<vmem>>, vector<16x128xf32>
    %c0_16 = arith.constant 0 : index
    %c0_17 = arith.constant 0 : index
    %18 = vector.load %arg5[%c0_16, %c0_17] : memref<128x128xf32, #tpu.memory_space<vmem>>, vector<128x128xf32>
    %cst_18 = arith.constant dense<0.000000e+00> : vector<16x128xf32>
    %19 = tpu.matmul %17, %18, %cst_18 {dimension_numbers = #tpu.dot_dimension_numbers<[1], [0], [0], [1], [0, 0, 1, 1], [], []>} : vector<16x128xf32>, vector<128x128xf32>, vector<16x128xf32> -> vector<16x128xf32>
    %c2 = arith.constant 2 : index
    %c0_19 = arith.constant 0 : index
    %20 = vector.load %arg6[%c2, %c0_19] : memref<8x128xf32, #tpu.memory_space<vmem>>, vector<1x128xf32>
    %21 = vector.broadcast %20 : vector<1x128xf32> to vector<16x128xf32>
    %22 = arith.addf %19, %21 : vector<16x128xf32>
    %c0_20 = arith.constant 0 : index
    %c0_21 = arith.constant 0 : index
    %23 = vector.load %arg6[%c0_20, %c0_21] : memref<8x128xf32, #tpu.memory_space<vmem>>, vector<1x128xf32>
    %24 = vector.broadcast %23 : vector<1x128xf32> to vector<16x128xf32>
    %25 = arith.addf %16, %24 : vector<16x128xf32>
    %cst_22 = arith.constant 0.707106769 : f32
    %26 = vector.broadcast %cst_22 : f32 to vector<16x128xf32>
    %27 = arith.mulf %25, %26 : vector<16x128xf32>
    %28 = math.absf %27 : vector<16x128xf32>
    %cst_23 = arith.constant 0.327591091 : f32
    %29 = vector.broadcast %cst_23 : f32 to vector<16x128xf32>
    %30 = arith.mulf %29, %28 : vector<16x128xf32>
    %cst_24 = arith.constant 1.000000e+00 : f32
    %31 = vector.broadcast %cst_24 : f32 to vector<16x128xf32>
    %32 = arith.addf %31, %30 : vector<16x128xf32>
    %33 = tpu.reciprocal %32 {approx = true} : vector<16x128xf32> -> vector<16x128xf32>
    %34 = arith.mulf %32, %33 : vector<16x128xf32>
    %cst_25 = arith.constant 2.000000e+00 : f32
    %35 = vector.broadcast %cst_25 : f32 to vector<16x128xf32>
    %36 = arith.subf %35, %34 : vector<16x128xf32>
    %37 = arith.mulf %33, %36 : vector<16x128xf32>
    %cst_26 = arith.constant 1.06140542 : f32
    %38 = vector.broadcast %cst_26 : f32 to vector<16x128xf32>
    %39 = arith.mulf %38, %37 : vector<16x128xf32>
    %cst_27 = arith.constant -1.45315206 : f32
    %40 = vector.broadcast %cst_27 : f32 to vector<16x128xf32>
    %41 = arith.addf %39, %40 : vector<16x128xf32>
    %42 = arith.mulf %41, %37 : vector<16x128xf32>
    %cst_28 = arith.constant 1.42141378 : f32
    %43 = vector.broadcast %cst_28 : f32 to vector<16x128xf32>
    %44 = arith.addf %42, %43 : vector<16x128xf32>
    %45 = arith.mulf %44, %37 : vector<16x128xf32>
    %cst_29 = arith.constant -0.284496725 : f32
    %46 = vector.broadcast %cst_29 : f32 to vector<16x128xf32>
    %47 = arith.addf %45, %46 : vector<16x128xf32>
    %48 = arith.mulf %47, %37 : vector<16x128xf32>
    %cst_30 = arith.constant 0.254829586 : f32
    %49 = vector.broadcast %cst_30 : f32 to vector<16x128xf32>
    %50 = arith.addf %48, %49 : vector<16x128xf32>
    %51 = arith.mulf %50, %37 : vector<16x128xf32>
    %cst_31 = arith.constant 0.000000e+00 : f32
    %52 = vector.broadcast %cst_31 : f32 to vector<16x128xf32>
    %53 = arith.subf %52, %28 : vector<16x128xf32>
    %54 = arith.mulf %53, %28 : vector<16x128xf32>
    %55 = math.exp %54 : vector<16x128xf32>
    %56 = arith.mulf %51, %55 : vector<16x128xf32>
    %cst_32 = arith.constant 1.000000e+00 : f32
    %57 = vector.broadcast %cst_32 : f32 to vector<16x128xf32>
    %58 = arith.subf %57, %56 : vector<16x128xf32>
    %cst_33 = arith.constant 0.000000e+00 : f32
    %59 = vector.broadcast %cst_33 : f32 to vector<16x128xf32>
    %60 = arith.cmpf oge, %27, %59 : vector<16x128xf32>
    %cst_34 = arith.constant 0.000000e+00 : f32
    %61 = vector.broadcast %cst_34 : f32 to vector<16x128xf32>
    %62 = arith.subf %61, %58 : vector<16x128xf32>
    %63 = arith.select %60, %58, %62 : vector<16x128xi1>, vector<16x128xf32>
    %cst_35 = arith.constant 5.000000e-01 : f32
    %64 = vector.broadcast %cst_35 : f32 to vector<16x128xf32>
    %65 = arith.mulf %64, %25 : vector<16x128xf32>
    %cst_36 = arith.constant 1.000000e+00 : f32
    %66 = vector.broadcast %cst_36 : f32 to vector<16x128xf32>
    %67 = arith.addf %66, %63 : vector<16x128xf32>
    %68 = arith.mulf %65, %67 : vector<16x128xf32>
    %c8_37 = arith.constant 8 : index
    %c0_38 = arith.constant 0 : index
    %69 = vector.load %arg9[%c8_37, %c0_38] : memref<24x128xf32, #tpu.memory_space<vmem>>, vector<16x128xf32>
    tpu.vector_store %arg9[%c8_37, %c0_38], %68 {strides = array<i32>} : memref<24x128xf32, #tpu.memory_space<vmem>>, vector<16x128xf32>,
    %c4_39 = arith.constant 4 : index
    %c0_40 = arith.constant 0 : index
    %70 = vector.load %arg9[%c4_39, %c0_40] : memref<24x128xf32, #tpu.memory_space<vmem>>, vector<16x128xf32>
    %c0_41 = arith.constant 0 : index
    %c0_42 = arith.constant 0 : index
    %71 = vector.load %arg4[%c0_41, %c0_42] : memref<384x128xf32, #tpu.memory_space<vmem>>, vector<128x128xf32>
    %cst_43 = arith.constant dense<0.000000e+00> : vector<16x128xf32>
    %72 = tpu.matmul %70, %71, %cst_43 {dimension_numbers = #tpu.dot_dimension_numbers<[1], [0], [0], [1], [0, 0, 1, 1], [], []>} : vector<16x128xf32>, vector<128x128xf32>, vector<16x128xf32> -> vector<16x128xf32>
    %c6_44 = arith.constant 6 : index
    %c0_45 = arith.constant 0 : index
    %73 = vector.load %arg9[%c6_44, %c0_45] : memref<24x128xf32, #tpu.memory_space<vmem>>, vector<16x128xf32>
    %c128_46 = arith.constant 128 : index
    %c0_47 = arith.constant 0 : index
    %74 = vector.load %arg4[%c128_46, %c0_47] : memref<384x128xf32, #tpu.memory_space<vmem>>, vector<128x128xf32>
    %cst_48 = arith.constant dense<0.000000e+00> : vector<16x128xf32>
    %75 = tpu.matmul %73, %74, %cst_48 {dimension_numbers = #tpu.dot_dimension_numbers<[1], [0], [0], [1], [0, 0, 1, 1], [], []>} : vector<16x128xf32>, vector<128x128xf32>, vector<16x128xf32> -> vector<16x128xf32>
    %76 = arith.addf %72, %75 : vector<16x128xf32>
    %c8_49 = arith.constant 8 : index
    %c0_50 = arith.constant 0 : index
    %77 = vector.load %arg9[%c8_49, %c0_50] : memref<24x128xf32, #tpu.memory_space<vmem>>, vector<16x128xf32>
    %c256_51 = arith.constant 256 : index
    %c0_52 = arith.constant 0 : index
    %78 = vector.load %arg4[%c256_51, %c0_52] : memref<384x128xf32, #tpu.memory_space<vmem>>, vector<128x128xf32>
    %cst_53 = arith.constant dense<0.000000e+00> : vector<16x128xf32>
    %79 = tpu.matmul %77, %78, %cst_53 {dimension_numbers = #tpu.dot_dimension_numbers<[1], [0], [0], [1], [0, 0, 1, 1], [], []>} : vector<16x128xf32>, vector<128x128xf32>, vector<16x128xf32> -> vector<16x128xf32>
    %80 = arith.addf %76, %79 : vector<16x128xf32>
    %c1 = arith.constant 1 : index
    %c0_54 = arith.constant 0 : index
    %81 = vector.load %arg6[%c1, %c0_54] : memref<8x128xf32, #tpu.memory_space<vmem>>, vector<1x128xf32>
    %82 = vector.broadcast %81 : vector<1x128xf32> to vector<16x128xf32>
    %83 = arith.addf %80, %82 : vector<16x128xf32>
    %cst_55 = arith.constant 0.707106769 : f32
    %84 = vector.broadcast %cst_55 : f32 to vector<16x128xf32>
    %85 = arith.mulf %83, %84 : vector<16x128xf32>
    %86 = math.absf %85 : vector<16x128xf32>
    %cst_56 = arith.constant 0.327591091 : f32
    %87 = vector.broadcast %cst_56 : f32 to vector<16x128xf32>
    %88 = arith.mulf %87, %86 : vector<16x128xf32>
    %cst_57 = arith.constant 1.000000e+00 : f32
    %89 = vector.broadcast %cst_57 : f32 to vector<16x128xf32>
    %90 = arith.addf %89, %88 : vector<16x128xf32>
    %91 = tpu.reciprocal %90 {approx = true} : vector<16x128xf32> -> vector<16x128xf32>
    %92 = arith.mulf %90, %91 : vector<16x128xf32>
    %cst_58 = arith.constant 2.000000e+00 : f32
    %93 = vector.broadcast %cst_58 : f32 to vector<16x128xf32>
    %94 = arith.subf %93, %92 : vector<16x128xf32>
    %95 = arith.mulf %91, %94 : vector<16x128xf32>
    %cst_59 = arith.constant 1.06140542 : f32
    %96 = vector.broadcast %cst_59 : f32 to vector<16x128xf32>
    %97 = arith.mulf %96, %95 : vector<16x128xf32>
    %cst_60 = arith.constant -1.45315206 : f32
    %98 = vector.broadcast %cst_60 : f32 to vector<16x128xf32>
    %99 = arith.addf %97, %98 : vector<16x128xf32>
    %100 = arith.mulf %99, %95 : vector<16x128xf32>
    %cst_61 = arith.constant 1.42141378 : f32
    %101 = vector.broadcast %cst_61 : f32 to vector<16x128xf32>
    %102 = arith.addf %100, %101 : vector<16x128xf32>
    %103 = arith.mulf %102, %95 : vector<16x128xf32>
    %cst_62 = arith.constant -0.284496725 : f32
    %104 = vector.broadcast %cst_62 : f32 to vector<16x128xf32>
    %105 = arith.addf %103, %104 : vector<16x128xf32>
    %106 = arith.mulf %105, %95 : vector<16x128xf32>
    %cst_63 = arith.constant 0.254829586 : f32
    %107 = vector.broadcast %cst_63 : f32 to vector<16x128xf32>
    %108 = arith.addf %106, %107 : vector<16x128xf32>
    %109 = arith.mulf %108, %95 : vector<16x128xf32>
    %cst_64 = arith.constant 0.000000e+00 : f32
    %110 = vector.broadcast %cst_64 : f32 to vector<16x128xf32>
    %111 = arith.subf %110, %86 : vector<16x128xf32>
    %112 = arith.mulf %111, %86 : vector<16x128xf32>
    %113 = math.exp %112 : vector<16x128xf32>
    %114 = arith.mulf %109, %113 : vector<16x128xf32>
    %cst_65 = arith.constant 1.000000e+00 : f32
    %115 = vector.broadcast %cst_65 : f32 to vector<16x128xf32>
    %116 = arith.subf %115, %114 : vector<16x128xf32>
    %cst_66 = arith.constant 0.000000e+00 : f32
    %117 = vector.broadcast %cst_66 : f32 to vector<16x128xf32>
    %118 = arith.cmpf oge, %85, %117 : vector<16x128xf32>
    %cst_67 = arith.constant 0.000000e+00 : f32
    %119 = vector.broadcast %cst_67 : f32 to vector<16x128xf32>
    %120 = arith.subf %119, %116 : vector<16x128xf32>
    %121 = arith.select %118, %116, %120 : vector<16x128xi1>, vector<16x128xf32>
    %cst_68 = arith.constant 5.000000e-01 : f32
    %122 = vector.broadcast %cst_68 : f32 to vector<16x128xf32>
    %123 = arith.mulf %122, %83 : vector<16x128xf32>
    %cst_69 = arith.constant 1.000000e+00 : f32
    %124 = vector.broadcast %cst_69 : f32 to vector<16x128xf32>
    %125 = arith.addf %124, %121 : vector<16x128xf32>
    %126 = arith.mulf %123, %125 : vector<16x128xf32>
    %127 = arith.addf %126, %22 : vector<16x128xf32>
    %128 = vector.extract_strided_slice %127 {offsets = [0, 0], sizes = [16, 8], strides = [1, 1]} : vector<16x128xf32> to vector<16x8xf32>
    %c0_70 = arith.constant 0 : index
    %c0_71 = arith.constant 0 : index
    %c0_72 = arith.constant 0 : index
    %129 = vector.load %arg7[%c0_70, %c0_71, %c0_72] : memref<1x16x8xf32, #tpu.memory_space<vmem>>, vector<1x16x8xf32>
    %130 = vector.shape_cast %129 : vector<1x16x8xf32> to vector<16x8xf32>
    %131 = vector.shape_cast %128 : vector<16x8xf32> to vector<1x16x8xf32>
    tpu.vector_store %arg7[%c0_70, %c0_71, %c0_72], %131 {strides = array<i32>} : memref<1x16x8xf32, #tpu.memory_space<vmem>>, vector<1x16x8xf32>,
    %c16 = arith.constant 16 : index
    %c0_73 = arith.constant 0 : index
    %132 = vector.load %arg8[%c16, %c0_73] : memref<24x128xf32, #tpu.memory_space<vmem>>, vector<8x128xf32>
    %c0_74 = arith.constant 0 : index
    %c0_75 = arith.constant 0 : index
    %133 = vector.load %arg8[%c0_74, %c0_75] : memref<24x128xf32, #tpu.memory_space<vmem>>, vector<8x128xf32>
    tpu.vector_store %arg8[%c0_74, %c0_75], %132 {strides = array<i32>} : memref<24x128xf32, #tpu.memory_space<vmem>>, vector<8x128xf32>,
    %c16_76 = arith.constant 16 : index
    %c0_77 = arith.constant 0 : index
    %134 = vector.load %arg9[%c16_76, %c0_77] : memref<24x128xf32, #tpu.memory_space<vmem>>, vector<8x128xf32>
    %c0_78 = arith.constant 0 : index
    %c0_79 = arith.constant 0 : index
    %135 = vector.load %arg9[%c0_78, %c0_79] : memref<24x128xf32, #tpu.memory_space<vmem>>, vector<8x128xf32>
    tpu.vector_store %arg9[%c0_78, %c0_79], %134 {strides = array<i32>} : memref<24x128xf32, #tpu.memory_space<vmem>>, vector<8x128xf32>,
    return
  }
  func.func @transform_0(%arg0: i32, %arg1: i32) -> (i32, i32, i32) {
    %c0_i32 = arith.constant 0 : i32
    %c0_i32_0 = arith.constant 0 : i32
    return %arg0, %arg1, %c0_i32 : i32, i32, i32
  }
  func.func @transform_1(%arg0: i32, %arg1: i32) -> (i32, i32) {
    %c0_i32 = arith.constant 0 : i32
    %c0_i32_0 = arith.constant 0 : i32
    %c0_i32_1 = arith.constant 0 : i32
    return %c0_i32, %c0_i32_0 : i32, i32
  }
  func.func @transform_2(%arg0: i32, %arg1: i32) -> (i32, i32) {
    %c0_i32 = arith.constant 0 : i32
    %c0_i32_0 = arith.constant 0 : i32
    %c0_i32_1 = arith.constant 0 : i32
    return %c0_i32, %c0_i32_0 : i32, i32
  }
  func.func @transform_3(%arg0: i32, %arg1: i32) -> (i32, i32) {
    %c0_i32 = arith.constant 0 : i32
    %c0_i32_0 = arith.constant 0 : i32
    %c0_i32_1 = arith.constant 0 : i32
    return %c0_i32, %c0_i32_0 : i32, i32
  }
  func.func @transform_4(%arg0: i32, %arg1: i32) -> (i32, i32) {
    %c0_i32 = arith.constant 0 : i32
    %c0_i32_0 = arith.constant 0 : i32
    %c0_i32_1 = arith.constant 0 : i32
    return %c0_i32, %c0_i32_0 : i32, i32
  }
  func.func @transform_5(%arg0: i32, %arg1: i32) -> (i32, i32, i32) {
    %c0_i32 = arith.constant 0 : i32
    %c0_i32_0 = arith.constant 0 : i32
    return %arg0, %arg1, %c0_i32 : i32, i32, i32
  }
}

</mosaic_0001>

<bundles_post_ra>
// kernel: tpu_custom_call.1
= control target key start
LH: loop header
LB: loop body
LE: loop exit
PB: predicated region body
PF: predicated region fallthrough
CT: control target
= control target key end

     0   :  { %10 = vsyncpa [#allocation5], 0  ;;  %s1991_s0 = inlined_call_operand.vmem [shape: f32[2,16,4], index: 0, kind: input, shape index: {}]   ;;  %s1992_s1 = inlined_call_operand.hbm [shape: f32[384,128], index: 1, kind: input, shape index: {}]   ;;  %s1993_s2 = inlined_call_operand.hbm [shape: f32[384,128], index: 2, kind: input, shape index: {}]   ;;  %s1994_s3 = inlined_call_operand.hbm [shape: f32[128,128], index: 3, kind: input, shape index: {}]   ;;  %s1995_s4 = inlined_call_operand.vmem [shape: f32[8,128], index: 4, kind: input, shape index: {}]   ;;  %s1996_s5 = inlined_call_operand.vmem [shape: f32[2,16,8], index: 5, kind: output, shape index: {}]  }
   0x1   :  { %11 = vsyncpa [#allocation7], 0  ;;  %s1853_s18 = smov 0   ;;  %s1855_s19 = smov 0  }
   0x2   :  { %s1857_s20 = smov 0  }
   0x3 LB: > { %s1240_s21 = sadd.s32 4294967295, %s1815_s20   ;;  %p1242_p0 = scmp.ge.s32.totalorder %s1815_s20, 1  ;;  %s1815_s20 = sphi %s1857_s20, %s17_s20   ;;  %s1811_s19 = sphi %s1855_s19, %s2002_s19   ;;  %s1807_s18 = sphi %s1853_s18, %s2001_s18  }
   0x4   : > { %p174_p1 = scmp.lt.s32.totalorder %s1815_s20, 3  ;;  %p1871_p2 = scmp.eq.s32.totalorder %s1240_s21, 0 }
   0x5   : > { %s1817_s24 = smov [#allocation6]   ;;  %s29_s27 = sadd.s32 1, %s1811_s19 }
   0x6   : > { %p1875_p3 = pnand %p1242_p0, %p174_p1  ;;  %s199_s25 = sshll.u32 %s1817_s24, 4  ;;  %s200_s25 = int_to_ptr.vmem [resolvable:$true] %s199_s25 }
   0x7   : > { %p1888_p6 = scmp.ge.s32.totalorder %s29_s27, 2  ;;  %s1818_s29 = smov [#allocation4]  }
   0x8   : > { %p1645_p4 = pneg %p1875_p3  ;;  %s186_s30 = sshll.u32 %s1818_s29, 4  ;;  %s187_s30 = int_to_ptr.vmem [resolvable:$true] %s186_s30 }
   0x9   : > { %s1718_s6 = scalar_lea.vmem %s200_s25, 6144  ;;  %p1726_p11 = scmp.lt.s32.totalorder %s200_s25, %s200_s25 }
   0xa   : > { %p1883_p5 = pnand %p1871_p2, %p1645_p4  ;;  %p1719_p8 = scmp.ne.s32.totalorder %s200_s25, %s1718_s6 }
   0xb   : > { %p1727_p12 = scmp.lt.s32.totalorder %s1718_s6, %s1718_s6 }
   0xc   : > { %p1709_p7 = pneg %p1883_p5 }
   0xd   : > { %p1728_p13 = por %p1727_p12, %p1726_p11 }
   0xe   : > { %p1721_p9 = pnand %p1719_p8, %p1709_p7 }
  0x10   : > { %p1722_p10 = pneg %p1721_p9 }
  0x12   : > { %p1729_p0 = pnand %p1728_p13, %p1722_p10 }
  0x14   : > { %1732 = shalt.err (!%p1729_p0)
}
  0x15   : > { %s1819_s7 = smov 128   ;;  %s1820_s8 = smov 8  }
  0x16   : > { %1651 = dma.hbm_to_vmem [thread:$0]  (!%p1883_p5), %s1993_s2, 6144, %s200_s25, [#allocation7], %s1819_s7, %s1819_s7, %s1820_s8  }
  0x17   : > { %s2004_s27 = smov (%p1888_p6, %s29_s27), 0  ;;  %s1744_s11 = scalar_lea.vmem %s187_s30, 6144 }
  0x18   : > { %p1745_p1 = scmp.ne.s32.totalorder %s187_s30, %s1744_s11  ;;  %p1752_p9 = scmp.lt.s32.totalorder %s187_s30, %s187_s30 }
  0x19   : > { %p1753_p10 = scmp.lt.s32.totalorder %s1744_s11, %s1744_s11 }
  0x1a   : > { %p1747_p4 = pnand %p1745_p1, %p1709_p7 }
  0x1b   : > { %p1754_p11 = por %p1753_p10, %p1752_p9 }
  0x1c   : > { %p1748_p8 = pneg %p1747_p4 }
  0x1e   : > { %p1755_p12 = pnand %p1754_p11, %p1748_p8 }
  0x20   : > { %1758 = shalt.err (!%p1755_p12)
}
  0x21   : > { %1648 = dma.hbm_to_vmem [thread:$0]  (!%p1883_p5), %s1992_s1, 6144, %s187_s30, [#allocation5], %s1819_s7, %s1819_s7, %s1820_s8  }
  0x22   : > { %s1821_s14 = smov [#allocation8]  }
  0x23   : > { %s212_s15 = sshll.u32 %s1821_s14, 4  ;;  %s213_s15 = int_to_ptr.vmem [resolvable:$true] %s212_s15 }
  0x24   : > { %s1770_s16 = scalar_lea.vmem %s213_s15, 2048  ;;  %p1778_p1 = scmp.lt.s32.totalorder %s213_s15, %s213_s15 }
  0x25   : > { %p1771_p6 = scmp.ne.s32.totalorder %s213_s15, %s1770_s16  ;;  %p1779_p4 = scmp.lt.s32.totalorder %s1770_s16, %s1770_s16 }
  0x27   : > { %p1773_p13 = pnand %p1771_p6, %p1709_p7  ;;  %p1780_p8 = por %p1779_p4, %p1778_p1 }
  0x29   : > { %p1774_p0 = pneg %p1773_p13 }
  0x2b   : > { %p1781_p9 = pnand %p1780_p8, %p1774_p0 }
  0x2d   : > { %1784 = shalt.err (!%p1781_p9)
}
  0x2e   : > { %1654 = dma.hbm_to_vmem [thread:$0]  (!%p1883_p5), %s1994_s3, 2048, %s213_s15, [#allocation7], %s1819_s7, %s1819_s7, %s1820_s8  }
  0x2f   : > { %244 = sbr.rel (%p1875_p3) target bundleno = 678 (0x2a6), region = 40 }
  0x34   : > { %1798 = dma.done.wait (%p1871_p2), [#allocation5], 6144  }
  0x35   : > { %1800 = vsyncadd (%p1871_p2), [#allocation5], 4294961152 }
  0x36   : > { %1802 = dma.done.wait (%p1871_p2), [#allocation7], 8192  }
  0x37   : > { %1804 = vsyncadd (%p1871_p2), [#allocation7], 4294959104  ;;  %v1822_v0 = vmov 0.0   ;;  %p289_p3 = scmp.lt.s32.totalorder %s1807_s18, 1  ;;  %v358_v1 = vld [vmem:[#allocation4 + $0xf8] sm:$0xff]  ;;  %v357_v3 = vld [vmem:[#allocation4 + $0xf0] sm:$0xff] }
  0x38   : > { %312 = vst [vmem:[#allocation2] sm:$0xff] %v1822_v0  ;;  %313 = vst [vmem:[#allocation2 + $0x8] sm:$0xff] %v1822_v0  ;;  %v340_v2 = vld [vmem:[#allocation4 + $0x78] sm:$0xff]  ;;  %1388 = vmatprep.subr.mxu0 %v358_v1  ;;  %v339_v4 = vld [vmem:[#allocation4 + $0x70] sm:$0xff]  ;;  %vm320_vm0 = vcmask 31744   ;;  %vm1115_vm5 = vcmask 64512  }
  0x39   : > { %314 = vst [vmem:[#allocation2 + $0x10] sm:$0xff] %v1822_v0  ;;  %315 = vst [vmem:[#allocation3] sm:$0xff] %v1822_v0  ;;  %s2006_s18 = smov (!%p289_p3, %s1807_s18), 1  ;;  %1423 = vmatprep.subr.mxu1 %v340_v2  ;;  %1389 = vmatpush3.msra.mxu0 %v358_v1  ;;  %v356_v5 = vld [vmem:[#allocation4 + $0xe8] sm:$0xff]  ;;  %v355_v7 = vld [vmem:[#allocation4 + $0xe0] sm:$0xff] }
  0x3a   : > { %1424 = vmatpush3.msra.mxu1 %v340_v2  ;;  %v338_v6 = vld [vmem:[#allocation4 + $0x68] sm:$0xff]  ;;  %1390 = vmatprep.subr.mxu0 %v357_v3  ;;  %v337_v8 = vld [vmem:[#allocation4 + $0x60] sm:$0xff]  ;;  %s1260_s22 = sshll.u32 %s2006_s18, 4  ;;  %v354_v9 = vld [vmem:[#allocation4 + $0xd8] sm:$0xff] }
  0x3b   : > { %1425 = vmatprep.subr.mxu1 %v339_v4  ;;  %1391 = vmatpush3.msra.mxu0 %v357_v3  ;;  %v336_v10 = vld [vmem:[#allocation4 + $0x58] sm:$0xff]  ;;  %s296_s25 = scalar_lea.vmem %s1991_s0, %s1260_s22  ;;  %v353_v11 = vld [vmem:[#allocation4 + $0xd0] sm:$0xff]  ;;  %v352_v13 = vld [vmem:[#allocation4 + $0xc8] sm:$0xff]  ;;  %s306_s10 = scalar_lea.vmem %s1996_s5, %s1260_s22 }
  0x3c   : > { %1426 = vmatpush3.msra.mxu1 %v339_v4  ;;  %1392 = vmatprep.subr.mxu0 %v356_v5  ;;  %v335_v12 = vld [vmem:[#allocation4 + $0x50] sm:$0xff]  ;;  %v334_v14 = vld [vmem:[#allocation4 + $0x48] sm:$0xff]  ;;  %v319_v16 = vld [vmem:[%s296_s25 + $0x8] sm:$0xff] }
  0x3d   : > { %1427 = vmatprep.subr.mxu1 %v338_v6  ;;  %1393 = vmatpush3.msra.mxu0 %v356_v5  ;;  %v318_v15 = vld [vmem:[%s296_s25] sm:$0xff]  ;;  %v351_v17 = vld [vmem:[#allocation4 + $0xc0] sm:$0xff]  ;;  %322 = vst.msk [vmem:[#allocation2 + $0x10] sm:$0xff] %vm320_vm0, %v319_v16  ;;  %v350_v19 = vld [vmem:[#allocation4 + $0xb8] sm:$0xff] }
  0x3e   : > { %1428 = vmatpush3.msra.mxu1 %v338_v6  ;;  %1394 = vmatprep.subr.mxu0 %v355_v7  ;;  %321 = vst.msk [vmem:[#allocation2 + $0x8] sm:$0xff] %vm320_vm0, %v318_v15  ;;  %v333_v18 = vld [vmem:[#allocation4 + $0x40] sm:$0xff]  ;;  %v332_v20 = vld [vmem:[#allocation4 + $0x38] sm:$0xff]  ;;  %v349_v21 = vld [vmem:[#allocation4 + $0xb0] sm:$0xff] }
  0x3f   : > { %1429 = vmatprep.subr.mxu1 %v337_v8  ;;  %1395 = vmatpush3.msra.mxu0 %v355_v7  ;;  %v331_v22 = vld [vmem:[#allocation4 + $0x30] sm:$0xff]  ;;  %v348_v23 = vld [vmem:[#allocation4 + $0xa8] sm:$0xff]  ;;  %v347_v28 = vld [vmem:[#allocation4 + $0xa0] sm:$0xff] }
  0x40   : > { %1430 = vmatpush3.msra.mxu1 %v337_v8  ;;  %1396 = vmatprep.subr.mxu0 %v354_v9  ;;  %v330_v24 = vld [vmem:[#allocation4 + $0x28] sm:$0xff]  ;;  %v329_v29 = vld [vmem:[#allocation4 + $0x20] sm:$0xff]  ;;  %v346_v30 = vld [vmem:[#allocation4 + $0x98] sm:$0xff] }
  0x41   : > { %1431 = vmatprep.subr.mxu1 %v336_v10  ;;  %1397 = vmatpush3.msra.mxu0 %v354_v9  ;;  %v328_v31 = vld [vmem:[#allocation4 + $0x18] sm:$0xff]  ;;  %v345_v32 = vld [vmem:[#allocation4 + $0x90] sm:$0xff]  ;;  %v344_v34 = vld [vmem:[#allocation4 + $0x88] sm:$0xff] }
  0x42   : > { %1432 = vmatpush3.msra.mxu1 %v336_v10  ;;  %1398 = vmatprep.subr.mxu0 %v353_v11  ;;  %v327_v33 = vld [vmem:[#allocation4 + $0x10] sm:$0xff]  ;;  %v326_v35 = vld [vmem:[#allocation4 + $0x8] sm:$0xff]  ;;  %v343_v36 = vld [vmem:[#allocation4 + $0x80] sm:$0xff] }
  0x43   : > { %1433 = vmatprep.subr.mxu1 %v335_v12  ;;  %1399 = vmatpush3.msra.mxu0 %v353_v11  ;;  %v325_v37 = vld [vmem:[#allocation4] sm:$0xff]  ;;  %v526_v40 = vld [vmem:[#allocation4 + $0x178] sm:$0xff]  ;;  %v525_v42 = vld [vmem:[#allocation4 + $0x170] sm:$0xff] }
  0x44   : > { %1434 = vmatpush3.msra.mxu1 %v335_v12  ;;  %1400 = vmatprep.subr.mxu0 %v352_v13  ;;  %v1953_v27 = vld [vmem:[#allocation2 + $0x10] sm:$0xff]  ;;  %v524_v43 = vld [vmem:[#allocation4 + $0x168] sm:$0xff]  ;;  %v522_v45 = vld [vmem:[#allocation4 + $0x158] sm:$0xff] }
  0x45   : > { %1435 = vmatprep.subr.mxu1 %v334_v14  ;;  %1401 = vmatpush3.msra.mxu0 %v352_v13  ;;  %v341_v25 = vld [vmem:[#allocation2 + $0x6] sm:$0xff]  ;;  %v342_v38 = vld [vmem:[#allocation2 + $0xe] sm:$0xff]  ;;  %v520_v47 = vld [vmem:[#allocation4 + $0x148] sm:$0xff] }
  0x46   : > { %1436 = vmatpush3.msra.mxu1 %v334_v14  ;;  %1402 = vmatprep.subr.mxu0 %v351_v17  ;;  %v323_v26 = vld [vmem:[#allocation2 + $0x4] sm:$0xff]  ;;  %v324_v39 = vld [vmem:[#allocation2 + $0xc] sm:$0xff]  ;;  %v516_v51 = vld [vmem:[#allocation4 + $0x128] sm:$0xff] }
  0x47   : > { %1437 = vmatprep.subr.mxu1 %v333_v18  ;;  %1403 = vmatpush3.msra.mxu0 %v351_v17  ;;  %1119 = vst [vmem:[#allocation2] sm:$0xff] %v1953_v27  ;;  %v509_v41 = vld [vmem:[#allocation2 + $0x8] sm:$0xff]  ;;  %v523_v44 = vld [vmem:[#allocation4 + $0x160] sm:$0xff]  ;;  %v521_v46 = vld [vmem:[#allocation4 + $0x150] sm:$0xff] }
  0x48   : > { %1438 = vmatpush3.msra.mxu1 %v333_v18  ;;  %1404 = vmatprep.subr.mxu0 %v350_v19  ;;  %v519_v48 = vld [vmem:[#allocation4 + $0x140] sm:$0xff]  ;;  %v518_v49 = vld [vmem:[#allocation4 + $0x138] sm:$0xff]  ;;  %v517_v50 = vld [vmem:[#allocation4 + $0x130] sm:$0xff] }
  0x49   : > { %1439 = vmatprep.subr.mxu1 %v332_v20  ;;  %1405 = vmatpush3.msra.mxu0 %v350_v19  ;;  %v515_v52 = vld [vmem:[#allocation4 + $0x120] sm:$0xff]  ;;  %v514_v53 = vld [vmem:[#allocation4 + $0x118] sm:$0xff]  ;;  %v513_v54 = vld [vmem:[#allocation4 + $0x110] sm:$0xff] }
  0x4a   : > { %1440 = vmatpush3.msra.mxu1 %v332_v20  ;;  %1406 = vmatprep.subr.mxu0 %v349_v21  ;;  %v512_v55 = vld [vmem:[#allocation4 + $0x108] sm:$0xff]  ;;  %v511_v56 = vld [vmem:[#allocation4 + $0x100] sm:$0xff]  ;;  %v619_v57 = vld [vmem:[#allocation8 + $0x78] sm:$0xff] }
  0x4b   : > { %1441 = vmatprep.subr.mxu1 %v331_v22  ;;  %1407 = vmatpush3.msra.mxu0 %v349_v21  ;;  %v618_v58 = vld [vmem:[#allocation8 + $0x70] sm:$0xff]  ;;  %v617_v59 = vld [vmem:[#allocation8 + $0x68] sm:$0xff]  ;;  %v616_v60 = vld [vmem:[#allocation8 + $0x60] sm:$0xff] }
  0x4c   : > { %1442 = vmatpush3.msra.mxu1 %v331_v22  ;;  %1408 = vmatprep.subr.mxu0 %v348_v23  ;;  %v615_v61 = vld [vmem:[#allocation8 + $0x58] sm:$0xff]  ;;  %v614_v62 = vld [vmem:[#allocation8 + $0x50] sm:$0xff]  ;;  %v613_v63 = vld [vmem:[#allocation8 + $0x48] sm:$0xff] }
  0x4d   : > { %1443 = vmatprep.subr.mxu1 %v330_v24  ;;  %1409 = vmatpush3.msra.mxu0 %v348_v23  ;;  %v612_v0 = vld [vmem:[#allocation8 + $0x40] sm:$0xff]  ;;  %v611_v1 = vld [vmem:[#allocation8 + $0x38] sm:$0xff]  ;;  %v610_v2 = vld [vmem:[#allocation8 + $0x30] sm:$0xff] }
  0x4e   : > { %1444 = vmatpush3.msra.mxu1 %v330_v24  ;;  %1410 = vmatprep.subr.mxu0 %v347_v28  ;;  %v609_v3 = vld [vmem:[#allocation8 + $0x28] sm:$0xff]  ;;  %v608_v4 = vld [vmem:[#allocation8 + $0x20] sm:$0xff]  ;;  %v607_v5 = vld [vmem:[#allocation8 + $0x18] sm:$0xff] }
  0x4f   : > { %1445 = vmatprep.subr.mxu1 %v329_v29  ;;  %1411 = vmatpush3.msra.mxu0 %v347_v28  ;;  %v606_v6 = vld [vmem:[#allocation8 + $0x10] sm:$0xff]  ;;  %v605_v7 = vld [vmem:[#allocation8 + $0x8] sm:$0xff]  ;;  %v604_v8 = vld [vmem:[#allocation8] sm:$0xff] }
  0x50   : > { %1446 = vmatpush3.msra.mxu1 %v329_v29  ;;  %1412 = vmatprep.subr.mxu0 %v346_v30  ;;  %v802_v9 = vld [vmem:[#allocation6 + $0xf8] sm:$0xff]  ;;  %v801_v11 = vld [vmem:[#allocation6 + $0xf0] sm:$0xff]  ;;  %v800_v13 = vld [vmem:[#allocation6 + $0xe8] sm:$0xff] }
  0x51   : > { %1447 = vmatprep.subr.mxu1 %v328_v31  ;;  %1413 = vmatpush3.msra.mxu0 %v346_v30  ;;  %v784_v10 = vld [vmem:[#allocation6 + $0x78] sm:$0xff]  ;;  %v783_v12 = vld [vmem:[#allocation6 + $0x70] sm:$0xff]  ;;  %v782_v14 = vld [vmem:[#allocation6 + $0x68] sm:$0xff] }
  0x52   : > { %1448 = vmatpush3.msra.mxu1 %v328_v31  ;;  %1414 = vmatprep.subr.mxu0 %v345_v32  ;;  %v799_v15 = vld [vmem:[#allocation6 + $0xe0] sm:$0xff]  ;;  %v798_v17 = vld [vmem:[#allocation6 + $0xd8] sm:$0xff]  ;;  %v797_v19 = vld [vmem:[#allocation6 + $0xd0] sm:$0xff] }
  0x53   : > { %1449 = vmatprep.subr.mxu1 %v327_v33  ;;  %1415 = vmatpush3.msra.mxu0 %v345_v32  ;;  %v781_v16 = vld [vmem:[#allocation6 + $0x60] sm:$0xff]  ;;  %v780_v18 = vld [vmem:[#allocation6 + $0x58] sm:$0xff]  ;;  %v779_v20 = vld [vmem:[#allocation6 + $0x50] sm:$0xff] }
  0x54   : > { %1450 = vmatpush3.msra.mxu1 %v327_v33  ;;  %1416 = vmatprep.subr.mxu0 %v344_v34  ;;  %v796_v21 = vld [vmem:[#allocation6 + $0xc8] sm:$0xff]  ;;  %v795_v23 = vld [vmem:[#allocation6 + $0xc0] sm:$0xff]  ;;  %v775_v28 = vld [vmem:[#allocation6 + $0x30] sm:$0xff] }
  0x55   : > { %1451 = vmatprep.subr.mxu1 %v326_v35  ;;  %1417 = vmatpush3.msra.mxu0 %v344_v34  ;;  %v778_v22 = vld [vmem:[#allocation6 + $0x48] sm:$0xff]  ;;  %v777_v24 = vld [vmem:[#allocation6 + $0x40] sm:$0xff]  ;;  %v790_v33 = vld [vmem:[#allocation6 + $0x98] sm:$0xff] }
  0x56   : > { %1452 = vmatpush3.msra.mxu1 %v326_v35  ;;  %1418 = vmatprep.subr.mxu0 %v343_v36  ;;  %v792_v29 = vld [vmem:[#allocation6 + $0xa8] sm:$0xff]  ;;  %v791_v31 = vld [vmem:[#allocation6 + $0xa0] sm:$0xff]  ;;  %v772_v34 = vld [vmem:[#allocation6 + $0x18] sm:$0xff] }
  0x57   : > { %1453 = vmatprep.subr.mxu1 %v325_v37  ;;  %1419 = vmatpush3.msra.mxu0 %v343_v36  ;;  %v774_v30 = vld [vmem:[#allocation6 + $0x28] sm:$0xff]  ;;  %v773_v32 = vld [vmem:[#allocation6 + $0x20] sm:$0xff]  ;;  %v789_v35 = vld [vmem:[#allocation6 + $0x90] sm:$0xff] }
  0x58   : > { %1420 = vmatprep.mubr.f32.mxu0 %v341_v25  ;;  %1454 = vmatpush3.msra.mxu1 %v325_v37  ;;  %v794_v25 = vld [vmem:[#allocation6 + $0xb8] sm:$0xff]  ;;  %v771_v36 = vld [vmem:[#allocation6 + $0x10] sm:$0xff]  ;;  %v788_v37 = vld [vmem:[#allocation6 + $0x88] sm:$0xff] }
  0x59   : > { %1455 = vmatprep.mubr.f32.mxu1 %v323_v26  ;;  %1421 = vmatmul.mubr.f32.vlgmr.msra.gmra.mxu0 %v342_v38  ;;  %v776_v26 = vld [vmem:[#allocation6 + $0x38] sm:$0xff]  ;;  %v770_v38 = vld [vmem:[#allocation6 + $0x8] sm:$0xff] }
  0x5a   : > { %1456 = vmatmul.mubr.f32.vlgmr.msra.gmra.mxu1 %v324_v39  ;;  %1458 = vmatprep.subr.mxu0 %v526_v40  ;;  %v787_v39 = vld [vmem:[#allocation6 + $0x80] sm:$0xff] }
  0x5b   : > { %1490 = vmatprep.mubr.f32.mxu0 %v509_v41  ;;  %1459 = vmatpush3.msra.mxu0 %v526_v40  ;;  %v769_v40 = vld [vmem:[#allocation6] sm:$0xff] }
  0x5c   : > { %1525 = vmatprep.mubr.f32.mxu1 %v509_v41  ;;  %1460 = vmatprep.subr.mxu0 %v525_v42  ;;  %v1958_v41 = vld [vmem:[#allocation6 + $0x178] sm:$0xff] }
  0x5d   : > { %1461 = vmatpush3.msra.mxu0 %v525_v42  ;;  %1493 = vmatprep.subr.mxu1 %v619_v57 }
  0x5e   : > { %1462 = vmatprep.subr.mxu0 %v524_v43  ;;  %1494 = vmatpush3.msra.mxu1 %v619_v57 }
  0x5f   : > { %1463 = vmatpush3.msra.mxu0 %v524_v43  ;;  %1495 = vmatprep.subr.mxu1 %v618_v58 }
  0x60   : > { %1464 = vmatprep.subr.mxu0 %v523_v44  ;;  %1496 = vmatpush3.msra.mxu1 %v618_v58 }
  0x61   : > { %1465 = vmatpush3.msra.mxu0 %v523_v44  ;;  %1497 = vmatprep.subr.mxu1 %v617_v59 }
  0x62   : > { %1466 = vmatprep.subr.mxu0 %v522_v45  ;;  %1498 = vmatpush3.msra.mxu1 %v617_v59 }
  0x63   : > { %1467 = vmatpush3.msra.mxu0 %v522_v45  ;;  %1499 = vmatprep.subr.mxu1 %v616_v60 }
  0x64   : > { %1468 = vmatprep.subr.mxu0 %v521_v46  ;;  %1500 = vmatpush3.msra.mxu1 %v616_v60 }
  0x65   : > { %1469 = vmatpush3.msra.mxu0 %v521_v46  ;;  %1501 = vmatprep.subr.mxu1 %v615_v61 }
  0x66   : > { %1470 = vmatprep.subr.mxu0 %v520_v47  ;;  %1502 = vmatpush3.msra.mxu1 %v615_v61 }
  0x67   : > { %1471 = vmatpush3.msra.mxu0 %v520_v47  ;;  %1503 = vmatprep.subr.mxu1 %v614_v62 }
  0x68   : > { %1472 = vmatprep.subr.mxu0 %v519_v48  ;;  %1504 = vmatpush3.msra.mxu1 %v614_v62 }
  0x69   : > { %1473 = vmatpush3.msra.mxu0 %v519_v48  ;;  %1505 = vmatprep.subr.mxu1 %v613_v63  ;;  %v1256_v48 = vld [vmem:[%s1995_s4] ss:$0 sm:$0xff] }
  0x6a   : > { %1474 = vmatprep.subr.mxu0 %v518_v49  ;;  %1506 = vmatpush3.msra.mxu1 %v613_v63 }
  0x6b   : > { %1475 = vmatpush3.msra.mxu0 %v518_v49  ;;  %1507 = vmatprep.subr.mxu1 %v612_v0 }
  0x6c   : > { %1476 = vmatprep.subr.mxu0 %v517_v50  ;;  %1508 = vmatpush3.msra.mxu1 %v612_v0 }
  0x6d   : > { %1477 = vmatpush3.msra.mxu0 %v517_v50  ;;  %1509 = vmatprep.subr.mxu1 %v611_v1 }
  0x6e   : > { %1478 = vmatprep.subr.mxu0 %v516_v51  ;;  %1510 = vmatpush3.msra.mxu1 %v611_v1 }
  0x6f   : > { %1479 = vmatpush3.msra.mxu0 %v516_v51  ;;  %1511 = vmatprep.subr.mxu1 %v610_v2 }
  0x70   : > { %1480 = vmatprep.subr.mxu0 %v515_v52  ;;  %1512 = vmatpush3.msra.mxu1 %v610_v2 }
  0x71   : > { %1481 = vmatpush3.msra.mxu0 %v515_v52  ;;  %1513 = vmatprep.subr.mxu1 %v609_v3 }
  0x72   : > { %1482 = vmatprep.subr.mxu0 %v514_v53  ;;  %1514 = vmatpush3.msra.mxu1 %v609_v3 }
  0x73   : > { %1483 = vmatpush3.msra.mxu0 %v514_v53  ;;  %1515 = vmatprep.subr.mxu1 %v608_v4 }
  0x74   : > { %1484 = vmatprep.subr.mxu0 %v513_v54  ;;  %1516 = vmatpush3.msra.mxu1 %v608_v4 }
  0x75   : > { %1485 = vmatpush3.msra.mxu0 %v513_v54  ;;  %1517 = vmatprep.subr.mxu1 %v607_v5 }
  0x76   : > { %1486 = vmatprep.subr.mxu0 %v512_v55  ;;  %1518 = vmatpush3.msra.mxu1 %v607_v5 }
  0x77   : > { %1487 = vmatpush3.msra.mxu0 %v512_v55  ;;  %1519 = vmatprep.subr.mxu1 %v606_v6 }
  0x78   : > { %1488 = vmatprep.subr.mxu0 %v511_v56  ;;  %1520 = vmatpush3.msra.mxu1 %v606_v6 }
  0x79   : > { %1489 = vmatpush3.msra.mxu0 %v511_v56  ;;  %1521 = vmatprep.subr.mxu1 %v605_v7 }
  0x7a   : > { %1491 = vmatmul.mubr.f32.vlgmr.msra.gmra.mxu0 %v1953_v27  ;;  %1522 = vmatpush3.msra.mxu1 %v605_v7 }
  0x7b   : > { %1523 = vmatprep.subr.mxu1 %v604_v8  ;;  %1528 = vmatprep.subr.mxu0 %v802_v9 }
  0x7c   : > { %1524 = vmatpush3.msra.mxu1 %v604_v8  ;;  %1529 = vmatpush3.msra.mxu0 %v802_v9 }
  0x7d   : > { %1563 = vmatprep.subr.mxu1 %v784_v10  ;;  %1526 = vmatmul.mubr.f32.vlgmr.msra.gmra.mxu1 %v1953_v27  ;;  %v793_v27 = vld [vmem:[#allocation6 + $0xb0] sm:$0xff] }
  0x7e   : > { %1530 = vmatprep.subr.mxu0 %v801_v11  ;;  %1564 = vmatpush3.msra.mxu1 %v784_v10 }
  0x7f   : > { %1531 = vmatpush3.msra.mxu0 %v801_v11  ;;  %1565 = vmatprep.subr.mxu1 %v783_v12 }
  0x80   : > { %1532 = vmatprep.subr.mxu0 %v800_v13  ;;  %1566 = vmatpush3.msra.mxu1 %v783_v12 }
  0x81   : > { %1533 = vmatpush3.msra.mxu0 %v800_v13  ;;  %1567 = vmatprep.subr.mxu1 %v782_v14 }
  0x82   : > { %1534 = vmatprep.subr.mxu0 %v799_v15  ;;  %1568 = vmatpush3.msra.mxu1 %v782_v14 }
  0x83   : > { %1535 = vmatpush3.msra.mxu0 %v799_v15  ;;  %1569 = vmatprep.subr.mxu1 %v781_v16 }
  0x84   : > { %1536 = vmatprep.subr.mxu0 %v798_v17  ;;  %1570 = vmatpush3.msra.mxu1 %v781_v16 }
  0x85   : > { %1537 = vmatpush3.msra.mxu0 %v798_v17  ;;  %1571 = vmatprep.subr.mxu1 %v780_v18 }
  0x86   : > { %1538 = vmatprep.subr.mxu0 %v797_v19  ;;  %1572 = vmatpush3.msra.mxu1 %v780_v18 }
  0x87   : > { %1539 = vmatpush3.msra.mxu0 %v797_v19  ;;  %1573 = vmatprep.subr.mxu1 %v779_v20 }
  0x88   : > { %1540 = vmatprep.subr.mxu0 %v796_v21  ;;  %1574 = vmatpush3.msra.mxu1 %v779_v20 }
  0x89   : > { %1541 = vmatpush3.msra.mxu0 %v796_v21  ;;  %1575 = vmatprep.subr.mxu1 %v778_v22 }
  0x8a   : > { %1542 = vmatprep.subr.mxu0 %v795_v23  ;;  %1576 = vmatpush3.msra.mxu1 %v778_v22 }
  0x8b   : > { %1543 = vmatpush3.msra.mxu0 %v795_v23  ;;  %1577 = vmatprep.subr.mxu1 %v777_v24 }
  0x8c   : > { %1544 = vmatprep.subr.mxu0 %v794_v25  ;;  %1578 = vmatpush3.msra.mxu1 %v777_v24 }
  0x8d   : > { %1545 = vmatpush3.msra.mxu0 %v794_v25  ;;  %1579 = vmatprep.subr.mxu1 %v776_v26 }
  0x8e   : > { %1546 = vmatprep.subr.mxu0 %v793_v27  ;;  %1580 = vmatpush3.msra.mxu1 %v776_v26 }
  0x8f   : > { %1547 = vmatpush3.msra.mxu0 %v793_v27  ;;  %1581 = vmatprep.subr.mxu1 %v775_v28 }
  0x90   : > { %1548 = vmatprep.subr.mxu0 %v792_v29  ;;  %1582 = vmatpush3.msra.mxu1 %v775_v28 }
  0x91   : > { %1549 = vmatpush3.msra.mxu0 %v792_v29  ;;  %1583 = vmatprep.subr.mxu1 %v774_v30 }
  0x92   : > { %1550 = vmatprep.subr.mxu0 %v791_v31  ;;  %1584 = vmatpush3.msra.mxu1 %v774_v30 }
  0x93   : > { %1551 = vmatpush3.msra.mxu0 %v791_v31  ;;  %1585 = vmatprep.subr.mxu1 %v773_v32 }
  0x94   : > { %1552 = vmatprep.subr.mxu0 %v790_v33  ;;  %1586 = vmatpush3.msra.mxu1 %v773_v32 }
  0x95   : > { %1553 = vmatpush3.msra.mxu0 %v790_v33  ;;  %1587 = vmatprep.subr.mxu1 %v772_v34 }
  0x96   : > { %1554 = vmatprep.subr.mxu0 %v789_v35  ;;  %1588 = vmatpush3.msra.mxu1 %v772_v34 }
  0x97   : > { %1555 = vmatpush3.msra.mxu0 %v789_v35  ;;  %1589 = vmatprep.subr.mxu1 %v771_v36 }
  0x98   : > { %1556 = vmatprep.subr.mxu0 %v788_v37  ;;  %1590 = vmatpush3.msra.mxu1 %v771_v36 }
  0x99   : > { %1557 = vmatpush3.msra.mxu0 %v788_v37  ;;  %1591 = vmatprep.subr.mxu1 %v770_v38 }
  0x9a   : > { %1558 = vmatprep.subr.mxu0 %v787_v39  ;;  %1592 = vmatpush3.msra.mxu1 %v770_v38 }
  0x9b   : > { %1559 = vmatpush3.msra.mxu0 %v787_v39  ;;  %1593 = vmatprep.subr.mxu1 %v769_v40 }
  0x9c   : > { %1598 = vmatprep.subr.mxu0 %v1958_v41  ;;  %1594 = vmatpush3.msra.mxu1 %v769_v40 }
 0x119   : > { %v1422_v42 = vpop.f32.mrf.mxu0 }
 0x11a   : > { %v1457_v43 = vpop.f32.mrf.mxu1 }
 0x11b   : > { %v425_v44 = vpop.f32.mrf.mxu0  ;;  %v506_v46 = vadd.f32 %v1457_v43, %v1422_v42 }
 0x11c   : > { %v500_v45 = vpop.f32.mrf.mxu1 }
 0x11d   : > { %v501_v49 = vadd.f32 %v500_v45, %v425_v44 }
 0x13a   : > { %v1492_v47 = vpop.f32.mrf.mxu0 }
 0x13b   : > { %v603_v50 = vadd.f32 %v1492_v47, %v506_v46 }
 0x13c   : > { %v593_v51 = vpop.f32.mrf.mxu0 }
 0x13d   : > { %v706_v52 = vadd.f32 %v1256_v48, %v603_v50  ;;  %v602_v53 = vadd.f32 %v593_v51, %v501_v49 }
 0x13f   : > { %v708_v54 = vmul.f32 0.70710677, %v706_v52  ;;  %v705_v55 = vadd.f32 %v1256_v48, %v602_v53  ;;  %v760_v39 = vmul.f32 0.5, %v706_v52  ;;  %v969_v53 = vld [vmem:[#allocation6 + $0x170] sm:$0xff]  ;;  %v968_v52 = vld [vmem:[#allocation6 + $0x168] sm:$0xff] }
 0x141   : > { %v710_v56 = vand.u32 2147483647, %v708_v54  ;;  %v707_v57 = vmul.f32 0.70710677, %v705_v55  ;;  %vm754_vm1 = vcmp.ge.f32.partialorder %v708_v54, 0.0  ;;  %v759_v45 = vmul.f32 0.5, %v705_v55 }
 0x142   : > { %v967_v54 = vld [vmem:[#allocation6 + $0x160] sm:$0xff]  ;;  %v966_v55 = vld [vmem:[#allocation6 + $0x158] sm:$0xff] }
 0x143   : > { %v712_v58 = vmul.f32 0.3275911, %v710_v56  ;;  %v709_v59 = vand.u32 2147483647, %v707_v57  ;;  %v742_v63 = vsub.f32 0.0, %v710_v56  ;;  %vm753_vm2 = vcmp.ge.f32.partialorder %v707_v57, 0.0 }
 0x144   : > { %v964_v57 = vld [vmem:[#allocation6 + $0x148] sm:$0xff] }
 0x145   : > { %v714_v60 = vadd.f32 1.0, %v712_v58  ;;  %v711_v61 = vmul.f32 0.3275911, %v709_v59  ;;  %v741_v2 = vsub.f32 0.0, %v709_v59  ;;  %v744_v5 = vmul.f32 %v742_v63, %v710_v56  ;;  %v965_v56 = vld [vmem:[#allocation6 + $0x150] sm:$0xff]  ;;  %v963_v58 = vld [vmem:[#allocation6 + $0x140] sm:$0xff] }
 0x146   : > { %v957_v63 = vld [vmem:[#allocation6 + $0x110] sm:$0xff] }
 0x147   : > { %1691 = vrcp.f32 %v714_v60  ;;  %v713_v62 = vadd.f32 1.0, %v711_v61  ;;  %v743_v9 = vmul.f32 %v741_v2, %v709_v59  ;;  %v747_v11 = vmul.f32 1.442695, %v744_v5  ;;  %v961_v59 = vld [vmem:[#allocation6 + $0x130] sm:$0xff]  ;;  %v959_v61 = vld [vmem:[#allocation6 + $0x120] sm:$0xff]  ;;  %v1965_v2 = vpop.f32.mrf.mxu1 }
 0x149   : > { %1693 = vrcp.f32 %v713_v62  ;;  %v745_v15 = vmul.f32 1.442695, %v743_v9 }
 0x14a   : > { %1695 = vpow2.f32 %v747_v11 }
 0x14b   : > { %1697 = vpow2.f32 %v745_v15 }
 0x154   : > { %v1692_v0 = vpop.eup %1691 }
 0x155   : > { %v718_v1 = vmul.f32 %v1692_v0, %v714_v60  ;;  %v960_v60 = vld [vmem:[#allocation6 + $0x128] sm:$0xff] }
 0x156   : > { %v1694_v3 = vpop.eup %1693 }
 0x157   : > { %v720_v4 = vsub.f32 2.0, %v718_v1  ;;  %v717_v6 = vmul.f32 %v1694_v3, %v713_v62  ;;  %v1696_v29 = vpop.eup %1695  ;;  %v958_v62 = vld [vmem:[#allocation6 + $0x118] sm:$0xff]  ;;  %v955_v1 = vld [vmem:[#allocation6 + $0x100] sm:$0xff] }
 0x158   : > { %v1698_v33 = vpop.eup %1697 }
 0x159   : > { %v722_v7 = vmul.f32 %v1692_v0, %v720_v4  ;;  %v719_v8 = vsub.f32 2.0, %v717_v6  ;;  %v956_v0 = vld [vmem:[#allocation6 + $0x108] sm:$0xff] }
 0x15b   : > { %v724_v10 = vmul.f32 1.0614054, %v722_v7  ;;  %v721_v12 = vmul.f32 %v1694_v3, %v719_v8  ;;  %v1967_v3 = vpop.f32.mrf.mxu1 }
 0x15d   : > { %v726_v13 = vadd.f32 -1.4531521, %v724_v10  ;;  %v723_v14 = vmul.f32 1.0614054, %v721_v12  ;;  %v1257_v10 = vld [vmem:[%s1995_s4 + $0x1] ss:$0 sm:$0xff] }
 0x15f   : > { %v728_v16 = vmul.f32 %v726_v13, %v722_v7  ;;  %v725_v17 = vadd.f32 -1.4531521, %v723_v14 }
 0x161   : > { %v730_v18 = vadd.f32 1.4214138, %v728_v16  ;;  %v727_v19 = vmul.f32 %v725_v17, %v721_v12 }
 0x163   : > { %v732_v20 = vmul.f32 %v730_v18, %v722_v7  ;;  %v729_v21 = vadd.f32 1.4214138, %v727_v19 }
 0x165   : > { %v734_v22 = vadd.f32 -0.28449672, %v732_v20  ;;  %v731_v23 = vmul.f32 %v729_v21, %v721_v12 }
 0x167   : > { %v736_v24 = vmul.f32 %v734_v22, %v722_v7  ;;  %v733_v25 = vadd.f32 -0.28449672, %v731_v23 }
 0x169   : > { %v738_v26 = vadd.f32 0.2548296, %v736_v24  ;;  %v735_v27 = vmul.f32 %v733_v25, %v721_v12 }
 0x16b   : > { %v740_v28 = vmul.f32 %v738_v26, %v722_v7  ;;  %v737_v30 = vadd.f32 0.2548296, %v735_v27 }
 0x16d   : > { %v750_v31 = vmul.f32 %v1696_v29, %v740_v28  ;;  %v739_v32 = vmul.f32 %v737_v30, %v721_v12 }
 0x16f   : > { %v752_v34 = vsub.f32 1.0, %v750_v31  ;;  %v749_v35 = vmul.f32 %v1698_v33, %v739_v32 }
 0x171   : > { %v756_v36 = vsub.f32 0.0, %v752_v34  ;;  %v751_v37 = vsub.f32 1.0, %v749_v35 }
 0x173   : > { %v758_v38 = vsel %vm754_vm1, %v752_v34, %v756_v36  ;;  %v755_v42 = vsub.f32 0.0, %v751_v37 }
 0x174   : > { %v762_v40 = vadd.f32 1.0, %v758_v38 }
 0x175   : > { %v757_v44 = vsel %vm753_vm2, %v751_v37, %v755_v42 }
 0x176   : > { %v764_v43 = vmul.f32 %v762_v40, %v760_v39  ;;  %v761_v46 = vadd.f32 1.0, %v757_v44 }
 0x178   : > { %766 = vst [vmem:[#allocation3 + $0x10] sm:$0xff] %v764_v43  ;;  %v763_v47 = vmul.f32 %v761_v46, %v759_v45 }
 0x17a   : > { %765 = vst [vmem:[#allocation3 + $0x8] sm:$0xff] %v763_v47 }
 0x181   : > { %v785_v48 = vld [vmem:[#allocation3 + $0x6] sm:$0xff]  ;;  %v786_v50 = vld [vmem:[#allocation3 + $0xe] sm:$0xff] }
 0x182   : > { %v767_v49 = vld [vmem:[#allocation3 + $0x4] sm:$0xff]  ;;  %1560 = vmatprep.mubr.f32.mxu0 %v785_v48  ;;  %v768_v51 = vld [vmem:[#allocation3 + $0xc] sm:$0xff] }
 0x183   : > { %1595 = vmatprep.mubr.f32.mxu1 %v767_v49  ;;  %1121 = vst [vmem:[#allocation3] sm:$0xff] %v764_v43  ;;  %1561 = vmatmul.mubr.f32.vlgmr.msra.gmra.mxu0 %v786_v50 }
 0x184   : > { %1596 = vmatmul.mubr.f32.vlgmr.msra.gmra.mxu1 %v768_v51  ;;  %1599 = vmatpush3.msra.mxu0 %v1958_v41  ;;  %v962_v41 = vld [vmem:[#allocation6 + $0x138] sm:$0xff] }
 0x185   : > { %1630 = vmatprep.mubr.f32.mxu0 %v763_v47  ;;  %1600 = vmatprep.subr.mxu0 %v969_v53 }
 0x186   : > { %1601 = vmatpush3.msra.mxu0 %v969_v53 }
 0x187   : > { %1602 = vmatprep.subr.mxu0 %v968_v52 }
 0x188   : > { %1603 = vmatpush3.msra.mxu0 %v968_v52 }
 0x189   : > { %1604 = vmatprep.subr.mxu0 %v967_v54 }
 0x18a   : > { %1605 = vmatpush3.msra.mxu0 %v967_v54 }
 0x18b   : > { %1606 = vmatprep.subr.mxu0 %v966_v55 }
 0x18c   : > { %1607 = vmatpush3.msra.mxu0 %v966_v55 }
 0x18d   : > { %1608 = vmatprep.subr.mxu0 %v965_v56 }
 0x18e   : > { %1609 = vmatpush3.msra.mxu0 %v965_v56 }
 0x18f   : > { %1610 = vmatprep.subr.mxu0 %v964_v57 }
 0x190   : > { %1611 = vmatpush3.msra.mxu0 %v964_v57 }
 0x191   : > { %1612 = vmatprep.subr.mxu0 %v963_v58 }
 0x192   : > { %1613 = vmatpush3.msra.mxu0 %v963_v58 }
 0x193   : > { %1614 = vmatprep.subr.mxu0 %v962_v41 }
 0x194   : > { %1615 = vmatpush3.msra.mxu0 %v962_v41 }
 0x195   : > { %1616 = vmatprep.subr.mxu0 %v961_v59 }
 0x196   : > { %1617 = vmatpush3.msra.mxu0 %v961_v59 }
 0x197   : > { %1618 = vmatprep.subr.mxu0 %v960_v60 }
 0x198   : > { %1619 = vmatpush3.msra.mxu0 %v960_v60 }
 0x199   : > { %1620 = vmatprep.subr.mxu0 %v959_v61 }
 0x19a   : > { %1621 = vmatpush3.msra.mxu0 %v959_v61 }
 0x19b   : > { %1622 = vmatprep.subr.mxu0 %v958_v62 }
 0x19c   : > { %1623 = vmatpush3.msra.mxu0 %v958_v62 }
 0x19d   : > { %1624 = vmatprep.subr.mxu0 %v957_v63 }
 0x19e   : > { %1625 = vmatpush3.msra.mxu0 %v957_v63 }
 0x19f   : > { %1626 = vmatprep.subr.mxu0 %v956_v0 }
 0x1a0   : > { %1627 = vmatpush3.msra.mxu0 %v956_v0  ;;  %v1255_v0 = vld [vmem:[%s1995_s4 + $0x2] ss:$0 sm:$0xff] }
 0x1a1   : > { %1628 = vmatprep.subr.mxu0 %v955_v1 }
 0x1a2   : > { %1629 = vmatpush3.msra.mxu0 %v955_v1 }
 0x1a3   : > { %1631 = vmatmul.mubr.f32.vlgmr.msra.gmra.mxu0 %v764_v43 }
 0x243   : > { %v1562_v4 = vpop.f32.mrf.mxu0 }
 0x244   : > { %v1597_v5 = vpop.f32.mrf.mxu1 }
 0x245   : > { %v869_v6 = vpop.f32.mrf.mxu0  ;;  %v950_v8 = vadd.f32 %v1597_v5, %v1562_v4 }
 0x246   : > { %v944_v7 = vpop.f32.mrf.mxu1 }
 0x247   : > { %v945_v11 = vadd.f32 %v944_v7, %v869_v6  ;;  %v697_v7 = vadd.f32 %v1965_v2, %v1255_v0 }
 0x263   : > { %v1632_v9 = vpop.f32.mrf.mxu0 }
 0x264   : > { %v1047_v12 = vadd.f32 %v1632_v9, %v950_v8 }
 0x265   : > { %v1037_v13 = vpop.f32.mrf.mxu0 }
 0x266   : > { %v1054_v14 = vadd.f32 %v1257_v10, %v1047_v12  ;;  %v1046_v15 = vadd.f32 %v1037_v13, %v945_v11  ;;  %v692_v13 = vadd.f32 %v1255_v0, %v1967_v3 }
 0x268   : > { %v1056_v16 = vmul.f32 0.70710677, %v1054_v14  ;;  %v1053_v17 = vadd.f32 %v1257_v10, %v1046_v15  ;;  %v1108_v4 = vmul.f32 0.5, %v1054_v14 }
 0x26a   : > { %v1058_v18 = vand.u32 2147483647, %v1056_v16  ;;  %v1055_v19 = vmul.f32 0.70710677, %v1053_v17  ;;  %vm1102_vm3 = vcmp.ge.f32.partialorder %v1056_v16, 0.0  ;;  %v1107_v10 = vmul.f32 0.5, %v1053_v17 }
 0x26c   : > { %v1060_v20 = vmul.f32 0.3275911, %v1058_v18  ;;  %v1057_v21 = vand.u32 2147483647, %v1055_v19  ;;  %v1090_v25 = vsub.f32 0.0, %v1058_v18  ;;  %vm1101_vm4 = vcmp.ge.f32.partialorder %v1055_v19, 0.0 }
 0x26e   : > { %v1062_v22 = vadd.f32 1.0, %v1060_v20  ;;  %v1059_v23 = vmul.f32 0.3275911, %v1057_v21  ;;  %v1089_v28 = vsub.f32 0.0, %v1057_v21  ;;  %v1092_v31 = vmul.f32 %v1090_v25, %v1058_v18 }
 0x270   : > { %1699 = vrcp.f32 %v1062_v22  ;;  %v1061_v24 = vadd.f32 1.0, %v1059_v23  ;;  %v1091_v35 = vmul.f32 %v1089_v28, %v1057_v21  ;;  %v1095_v37 = vmul.f32 1.442695, %v1092_v31 }
 0x272   : > { %1701 = vrcp.f32 %v1061_v24  ;;  %v1093_v42 = vmul.f32 1.442695, %v1091_v35 }
 0x273   : > { %1703 = vpow2.f32 %v1095_v37 }
 0x274   : > { %1705 = vpow2.f32 %v1093_v42 }
 0x27d   : > { %v1700_v26 = vpop.eup %1699 }
 0x27e   : > { %v1066_v27 = vmul.f32 %v1700_v26, %v1062_v22 }
 0x27f   : > { %v1702_v29 = vpop.eup %1701 }
 0x280   : > { %v1068_v30 = vsub.f32 2.0, %v1066_v27  ;;  %v1065_v32 = vmul.f32 %v1702_v29, %v1061_v24  ;;  %v1704_v56 = vpop.eup %1703 }
 0x281   : > { %v1706_v59 = vpop.eup %1705 }
 0x282   : > { %v1070_v33 = vmul.f32 %v1700_v26, %v1068_v30  ;;  %v1067_v34 = vsub.f32 2.0, %v1065_v32 }
 0x284   : > { %v1072_v36 = vmul.f32 1.0614054, %v1070_v33  ;;  %v1069_v38 = vmul.f32 %v1702_v29, %v1067_v34 }
 0x286   : > { %v1074_v39 = vadd.f32 -1.4531521, %v1072_v36  ;;  %v1071_v40 = vmul.f32 1.0614054, %v1069_v38 }
 0x288   : > { %v1076_v43 = vmul.f32 %v1074_v39, %v1070_v33  ;;  %v1073_v44 = vadd.f32 -1.4531521, %v1071_v40 }
 0x28a   : > { %v1078_v45 = vadd.f32 1.4214138, %v1076_v43  ;;  %v1075_v46 = vmul.f32 %v1073_v44, %v1069_v38 }
 0x28c   : > { %v1080_v47 = vmul.f32 %v1078_v45, %v1070_v33  ;;  %v1077_v48 = vadd.f32 1.4214138, %v1075_v46 }
 0x28e   : > { %v1082_v49 = vadd.f32 -0.28449672, %v1080_v47  ;;  %v1079_v50 = vmul.f32 %v1077_v48, %v1069_v38 }
 0x290   : > { %v1084_v51 = vmul.f32 %v1082_v49, %v1070_v33  ;;  %v1081_v53 = vadd.f32 -0.28449672, %v1079_v50 }
 0x292   : > { %v1086_v52 = vadd.f32 0.2548296, %v1084_v51  ;;  %v1083_v54 = vmul.f32 %v1081_v53, %v1069_v38 }
 0x294   : > { %v1088_v55 = vmul.f32 %v1086_v52, %v1070_v33  ;;  %v1085_v57 = vadd.f32 0.2548296, %v1083_v54 }
 0x296   : > { %v1098_v58 = vmul.f32 %v1704_v56, %v1088_v55  ;;  %v1087_v41 = vmul.f32 %v1085_v57, %v1069_v38 }
 0x298   : > { %v1100_v60 = vsub.f32 1.0, %v1098_v58  ;;  %v1097_v61 = vmul.f32 %v1706_v59, %v1087_v41 }
 0x29a   : > { %v1104_v62 = vsub.f32 0.0, %v1100_v60  ;;  %v1099_v63 = vsub.f32 1.0, %v1097_v61 }
 0x29c   : > { %v1106_v1 = vsel %vm1102_vm3, %v1100_v60, %v1104_v62  ;;  %v1103_v6 = vsub.f32 0.0, %v1099_v63 }
 0x29d   : > { %v1110_v5 = vadd.f32 1.0, %v1106_v1 }
 0x29e   : > { %v1105_v9 = vsel %vm1101_vm4, %v1099_v63, %v1103_v6 }
 0x29f   : > { %v1112_v8 = vmul.f32 %v1110_v5, %v1108_v4  ;;  %v1109_v11 = vadd.f32 1.0, %v1105_v9 }
 0x2a1   : > { %v1114_v12 = vadd.f32 %v1112_v8, %v697_v7  ;;  %v1111_v15 = vmul.f32 %v1109_v11, %v1107_v10 }
 0x2a3   : > { %1117 = vst.msk [vmem:[%s306_s10 + $0x8] sm:$0xff] %vm1115_vm5, %v1114_v12  ;;  %v1113_v14 = vadd.f32 %v1111_v15, %v692_v13 }
 0x2a5   : > { %1116 = vst.msk [vmem:[%s306_s10] sm:$0xff] %vm1115_vm5, %v1113_v14 }
 0x2a6 PF: > { %s17_s20 = sadd.s32 1, %s1815_s20   ;;  %s2001_s18 = smov %s1811_s19 }
 0x2a7   : > { %p14_p2 = scmp.ge.s32.totalorder %s17_s20, 4   ;;  %s2002_s19 = smov %s2004_s27 }
 0x2a9   :  { %16 = sbr.rel (!%p14_p2) target bundleno = 3 (0x3), region = 87 }
 0x2ae   :  { %1152 = vsyncpa [#allocation5], 1 }
 0x2af   :  { %1154 = vsyncpa [#allocation5 + $0x1], 1 }
 0x2b0   :  { %1155 = vsyncpa [#allocation7], 1 }

</bundles_post_ra>
